<compile_context>
chip_gen: v5e
topology: v5e:2x2
jax: 0.10.0
libtpu: 0.0.40
codegen_flags: <defaults>
</compile_context>

<pallas_src>
import math
import jax
import jax.numpy as jnp
from jax.experimental import pallas as pl
from jax.experimental.pallas import tpu as pltpu

D_MODEL = 32
N_HEADS = 4
D_HEAD = D_MODEL // N_HEADS
D_FF = 64
EPS = 1e-6   # LayerNorm eps of the Annotated-Transformer LayerNorm


def _layernorm(x, gamma, beta):
    # Annotated-Transformer LayerNorm: a_2 * (x - mean) / (std + eps) + b_2
    # torch.std default is the *unbiased* estimator -> divide by (D - 1).
    # (kernel-side helper: uses pl.reciprocal, so only call inside the kernel)
    d = x.shape[-1]
    mean = jnp.mean(x, axis=-1, keepdims=True)
    var = jnp.sum((x - mean) ** 2, axis=-1, keepdims=True) * (1.0 / (d - 1))
    inv = pl.reciprocal(jnp.sqrt(var) + EPS)   # exact 1/x; one recip -> D muls
    return gamma * (x - mean) * inv + beta


def encoder_layer_kernel(x_ref, bias_ref, ln1g_ref, ln1b_ref,
                         wqkv_ref, bqkv_ref, wo_ref, bo_ref,
                         ln2g_ref, ln2b_ref, w1_ref, b1_ref, w2_ref, b2_ref,
                         o_ref):
    """One batch element: fused (residual + attention) then (residual + FFN)."""
    x = x_ref[0]              # (S, D)
    bias = bias_ref[0]        # (S, S) additive mask bias (0 = keep, -1e9 = masked)
    S = x.shape[0]

    # ---------------- sublayer 0: x + SelfAttn(LayerNorm1(x)) ----------------
    xn = _layernorm(x, ln1g_ref[...], ln1b_ref[...])
    # Fused QKV projection; the q columns are pre-scaled by 1/sqrt(d_head) on host.
    qkv = jnp.dot(xn, wqkv_ref[...], preferred_element_type=jnp.float32) + bqkv_ref[...]
    wo = wo_ref[...]

    attn = jnp.zeros((S, D_MODEL), jnp.float32)
    for h in range(N_HEADS):  # static unroll over heads (no 3-D relayouts)
        lo = h * D_HEAD
        qh = qkv[:, lo:lo + D_HEAD]                                   # (S, dh)
        kh = qkv[:, D_MODEL + lo:D_MODEL + lo + D_HEAD]
        vh = qkv[:, 2 * D_MODEL + lo:2 * D_MODEL + lo + D_HEAD]
        s = jnp.dot(qh, kh.T, preferred_element_type=jnp.float32) + bias   # (S, S)
        m = jnp.max(s, axis=-1, keepdims=True)
        p = jnp.exp(s - m)
        p = p * pl.reciprocal(jnp.sum(p, axis=-1, keepdims=True))     # softmax
        head = jnp.dot(p, vh, preferred_element_type=jnp.float32)     # (S, dh)
        # Accumulate head @ Wo[row block]: sublane-aligned slice of Wo, no concat.
        attn = attn + jnp.dot(head, wo[lo:lo + D_HEAD, :],
                              preferred_element_type=jnp.float32)
    # TODO(synk): dropout omitted (eval mode / p=0) — no RNG-matched PyTorch dropout.
    y1 = x + attn + bo_ref[...]

    # ---------------- sublayer 1: y1 + FFN(LayerNorm2(y1)) ----------------
    yn = _layernorm(y1, ln2g_ref[...], ln2b_ref[...])
    hdn = jnp.dot(yn, w1_ref[...], preferred_element_type=jnp.float32) + b1_ref[...]
    hdn = jnp.maximum(hdn, 0.0)                                       # ReLU
    y2 = y1 + jnp.dot(hdn, w2_ref[...], preferred_element_type=jnp.float32) + b2_ref[...]
    o_ref[0] = y2


def encoder_layer(x, mask, params):
    B, S, D = x.shape
    assert D == D_MODEL

    # Host-side parameter fusion (done once per call here; in production these
    # would be pre-fused at parameter-load time).
    scale = 1.0 / math.sqrt(D_HEAD)
    w_qkv = jnp.concatenate(
        [params["wq"] * scale, params["wk"], params["wv"]], axis=1)   # (D, 3D)
    b_qkv = jnp.concatenate(
        [params["bq"] * scale, params["bk"], params["bv"]], axis=1)   # (1, 3D)
    # Additive mask bias: 0 where mask==1 (attend), -1e9 where mask==0 (masked).
    mask_bias = (mask - 1.0) * 1e9

    x_spec = pl.BlockSpec((1, S, D), lambda b: (b, 0, 0))
    bias_spec = pl.BlockSpec((1, S, S), lambda b: (b, 0, 0))
    vec = lambda n: pl.BlockSpec((1, n), lambda b: (0, 0))
    mat = lambda m, n: pl.BlockSpec((m, n), lambda b: (0, 0))

    return pl.pallas_call(
        encoder_layer_kernel,
        out_shape=jax.ShapeDtypeStruct((B, S, D), jnp.float32),
        grid=(B,),
        in_specs=[x_spec, bias_spec,
                  vec(D), vec(D),
                  mat(D, 3 * D), vec(3 * D),
                  mat(D, D), vec(D),
                  vec(D), vec(D),
                  mat(D, D_FF), vec(D_FF),
                  mat(D_FF, D), vec(D)],
        out_specs=x_spec,
        compiler_params=pltpu.CompilerParams(
            dimension_semantics=("parallel",),      # megacore sharding on v7x
            vmem_limit_bytes=32 * 1024 * 1024,      # explicit budget (safe on v5e/v6e/v7x)
        ),
    )(x, mask_bias, params["ln1_g"], params["ln1_b"],
      w_qkv, b_qkv, params["wo"], params["bo"],
      params["ln2_g"], params["ln2_b"],
      params["w1"], params["b1"], params["w2"], params["b2"])


def _reference(x, mask, p):
    """Pure-JAX reference of the same forward pass, written independently of
    the kernel helpers (torch-style unbiased std, eps outside sqrt, explicit
    divides, where-based masking, un-fused QKV)."""
    def ln(z, g, b):
        mean = jnp.mean(z, axis=-1, keepdims=True)
        std = jnp.sqrt(jnp.sum((z - mean) ** 2, axis=-1, keepdims=True)
                       / (z.shape[-1] - 1))
        return g * (z - mean) / (std + EPS) + b

    xn = ln(x, p["ln1_g"], p["ln1_b"])
    q = xn @ p["wq"] + p["bq"]
    k = xn @ p["wk"] + p["bk"]
    v = xn @ p["wv"] + p["bv"]
    B, S, D = x.shape
    qh = q.reshape(B, S, N_HEADS, D_HEAD).transpose(0, 2, 1, 3)
    kh = k.reshape(B, S, N_HEADS, D_HEAD).transpose(0, 2, 1, 3)
    vh = v.reshape(B, S, N_HEADS, D_HEAD).transpose(0, 2, 1, 3)
    scores = jnp.einsum("bhqd,bhkd->bhqk", qh, kh) / math.sqrt(D_HEAD)
    scores = jnp.where(mask[:, None, :, :] == 0.0, -1e9, scores)
    probs = jax.nn.softmax(scores, axis=-1)
    ctx = jnp.einsum("bhqk,bhkd->bhqd", probs, vh).transpose(0, 2, 1, 3).reshape(B, S, D)
    y1 = x + (ctx @ p["wo"] + p["bo"])
    yn = ln(y1, p["ln2_g"], p["ln2_b"])
    h = jnp.maximum(yn @ p["w1"] + p["b1"], 0.0)
    return y1 + (h @ p["w2"] + p["b2"])


def make_params(key):
    ks = jax.random.split(key, 8)
    def w(k, m, n):
        return 0.1 * jax.random.normal(k, (m, n), jnp.float32)
    # Weights stored in (in, out) orientation, i.e. already W.T relative to nn.Linear.
    return {
        "ln1_g": jnp.ones((1, D_MODEL), jnp.float32),
        "ln1_b": jnp.zeros((1, D_MODEL), jnp.float32),
        "wq": w(ks[0], D_MODEL, D_MODEL), "bq": 0.01 * jnp.ones((1, D_MODEL), jnp.float32),
        "wk": w(ks[1], D_MODEL, D_MODEL), "bk": 0.01 * jnp.ones((1, D_MODEL), jnp.float32),
        "wv": w(ks[2], D_MODEL, D_MODEL), "bv": 0.01 * jnp.ones((1, D_MODEL), jnp.float32),
        "wo": w(ks[3], D_MODEL, D_MODEL), "bo": 0.01 * jnp.ones((1, D_MODEL), jnp.float32),
        "ln2_g": jnp.ones((1, D_MODEL), jnp.float32),
        "ln2_b": jnp.zeros((1, D_MODEL), jnp.float32),
        "w1": w(ks[4], D_MODEL, D_FF), "b1": 0.01 * jnp.ones((1, D_FF), jnp.float32),
        "w2": w(ks[5], D_FF, D_MODEL), "b2": 0.01 * jnp.ones((1, D_MODEL), jnp.float32),
    }


if __name__ == "__main__":
    key = jax.random.PRNGKey(0)
    kx, kp = jax.random.split(key)
    B, S = 2, 8
    x = jax.random.normal(kx, (B, S, D_MODEL), jnp.float32)
    mask = jnp.ones((B, S, S), jnp.float32)
    mask = mask.at[1, :, 6:].set(0.0)       # pretend last 2 tokens of batch 1 are padding
    params = make_params(kp)

    out = encoder_layer(x, mask, params)
    out = jax.block_until_ready(out)

    ref = _reference(x, mask, params)
    assert out.shape == (B, S, D_MODEL)
    assert jnp.allclose(out, ref, atol=1e-4, rtol=1e-4), "mismatch vs JAX reference"
    print("KERNEL_OK")
</pallas_src>

<mosaic_0001>
module attributes {stable_mosaic.version = 11 : i64} {
  func.func @encoder_layer_kernel(%arg0: i32, %arg1: memref<1x8x32xf32, #tpu.memory_space<vmem>>, %arg2: memref<1x8x8xf32, #tpu.memory_space<vmem>>, %arg3: memref<1x32xf32, #tpu.memory_space<vmem>>, %arg4: memref<1x32xf32, #tpu.memory_space<vmem>>, %arg5: memref<32x96xf32, #tpu.memory_space<vmem>>, %arg6: memref<1x96xf32, #tpu.memory_space<vmem>>, %arg7: memref<32x32xf32, #tpu.memory_space<vmem>>, %arg8: memref<1x32xf32, #tpu.memory_space<vmem>>, %arg9: memref<1x32xf32, #tpu.memory_space<vmem>>, %arg10: memref<1x32xf32, #tpu.memory_space<vmem>>, %arg11: memref<32x64xf32, #tpu.memory_space<vmem>>, %arg12: memref<1x64xf32, #tpu.memory_space<vmem>>, %arg13: memref<64x32xf32, #tpu.memory_space<vmem>>, %arg14: memref<1x32xf32, #tpu.memory_space<vmem>>, %arg15: memref<1x8x32xf32, #tpu.memory_space<vmem>>) attributes {dimension_semantics = [#tpu.dimension_semantics<parallel>], iteration_bounds = array<i64: 2>, scalar_prefetch = 0 : i64, scratch_operands = 0 : i64, tpu.core_type = #tpu.core_type<tc>, window_params = [{transform_indices = @transform_0, window_bounds = array<i64: 1, 8, 32>}, {transform_indices = @transform_1, window_bounds = array<i64: 1, 8, 8>}, {pipeline_mode = #tpu.pipeline_mode<synchronous>, transform_indices = @transform_2, window_bounds = array<i64: 1, 32>}, {pipeline_mode = #tpu.pipeline_mode<synchronous>, transform_indices = @transform_3, window_bounds = array<i64: 1, 32>}, {pipeline_mode = #tpu.pipeline_mode<synchronous>, transform_indices = @transform_4, window_bounds = array<i64: 32, 96>}, {pipeline_mode = #tpu.pipeline_mode<synchronous>, transform_indices = @transform_5, window_bounds = array<i64: 1, 96>}, {pipeline_mode = #tpu.pipeline_mode<synchronous>, transform_indices = @transform_6, window_bounds = array<i64: 32, 32>}, {pipeline_mode = #tpu.pipeline_mode<synchronous>, transform_indices = @transform_7, window_bounds = array<i64: 1, 32>}, {pipeline_mode = #tpu.pipeline_mode<synchronous>, transform_indices = @transform_8, window_bounds = array<i64: 1, 32>}, {pipeline_mode = #tpu.pipeline_mode<synchronous>, transform_indices = @transform_9, window_bounds = array<i64: 1, 32>}, {pipeline_mode = #tpu.pipeline_mode<synchronous>, transform_indices = @transform_10, window_bounds = array<i64: 32, 64>}, {pipeline_mode = #tpu.pipeline_mode<synchronous>, transform_indices = @transform_11, window_bounds = array<i64: 1, 64>}, {pipeline_mode = #tpu.pipeline_mode<synchronous>, transform_indices = @transform_12, window_bounds = array<i64: 64, 32>}, {pipeline_mode = #tpu.pipeline_mode<synchronous>, transform_indices = @transform_13, window_bounds = array<i64: 1, 32>}, {transform_indices = @transform_14, window_bounds = array<i64: 1, 8, 32>}]} {
    %c0 = arith.constant 0 : index
    %c0_0 = arith.constant 0 : index
    %c0_1 = arith.constant 0 : index
    %0 = vector.load %arg1[%c0, %c0_0, %c0_1] : memref<1x8x32xf32, #tpu.memory_space<vmem>>, vector<1x8x32xf32>
    %1 = vector.shape_cast %0 : vector<1x8x32xf32> to vector<8x32xf32>
    %c0_2 = arith.constant 0 : index
    %c0_3 = arith.constant 0 : index
    %c0_4 = arith.constant 0 : index
    %2 = vector.load %arg2[%c0_2, %c0_3, %c0_4] : memref<1x8x8xf32, #tpu.memory_space<vmem>>, vector<1x8x8xf32>
    %3 = vector.shape_cast %2 : vector<1x8x8xf32> to vector<8x8xf32>
    %c0_5 = arith.constant 0 : index
    %c0_6 = arith.constant 0 : index
    %4 = vector.load %arg3[%c0_5, %c0_6] : memref<1x32xf32, #tpu.memory_space<vmem>>, vector<1x32xf32>
    %c0_7 = arith.constant 0 : index
    %c0_8 = arith.constant 0 : index
    %5 = vector.load %arg4[%c0_7, %c0_8] : memref<1x32xf32, #tpu.memory_space<vmem>>, vector<1x32xf32>
    %cst = arith.constant dense<0.000000e+00> : vector<8xf32>
    %6 = vector.multi_reduction <add>, %1, %cst [1] : vector<8x32xf32> to vector<8xf32>
    %7 = vector.shape_cast %6 : vector<8xf32> to vector<8x1xf32>
    %cst_9 = arith.constant 3.200000e+01 : f32
    %8 = vector.broadcast %cst_9 : f32 to vector<8x1xf32>
    %9 = arith.divf %7, %8 : vector<8x1xf32>
    %10 = vector.broadcast %9 : vector<8x1xf32> to vector<8x32xf32>
    %11 = arith.subf %1, %10 : vector<8x32xf32>
    %12 = arith.mulf %11, %11 : vector<8x32xf32>
    %cst_10 = arith.constant dense<0.000000e+00> : vector<8xf32>
    %13 = vector.multi_reduction <add>, %12, %cst_10 [1] : vector<8x32xf32> to vector<8xf32>
    %14 = vector.shape_cast %13 : vector<8xf32> to vector<8x1xf32>
    %cst_11 = arith.constant 0.0322580636 : f32
    %15 = vector.broadcast %cst_11 : f32 to vector<8x1xf32>
    %16 = arith.mulf %14, %15 : vector<8x1xf32>
    %17 = math.sqrt %16 : vector<8x1xf32>
    %cst_12 = arith.constant 9.99999997E-7 : f32
    %18 = vector.broadcast %cst_12 : f32 to vector<8x1xf32>
    %19 = arith.addf %17, %18 : vector<8x1xf32>
    %20 = tpu.reciprocal %19 : vector<8x1xf32> -> vector<8x1xf32>
    %21 = vector.broadcast %9 : vector<8x1xf32> to vector<8x32xf32>
    %22 = arith.subf %1, %21 : vector<8x32xf32>
    %23 = vector.broadcast %4 : vector<1x32xf32> to vector<8x32xf32>
    %24 = arith.mulf %23, %22 : vector<8x32xf32>
    %25 = vector.broadcast %20 : vector<8x1xf32> to vector<8x32xf32>
    %26 = arith.mulf %24, %25 : vector<8x32xf32>
    %27 = vector.broadcast %5 : vector<1x32xf32> to vector<8x32xf32>
    %28 = arith.addf %26, %27 : vector<8x32xf32>
    %c0_13 = arith.constant 0 : index
    %c0_14 = arith.constant 0 : index
    %29 = vector.load %arg5[%c0_13, %c0_14] : memref<32x96xf32, #tpu.memory_space<vmem>>, vector<32x96xf32>
    %cst_15 = arith.constant dense<0.000000e+00> : vector<8x96xf32>
    %30 = tpu.matmul %28, %29, %cst_15 {dimension_numbers = #tpu.dot_dimension_numbers<[1], [0], [0], [1], [0, 0, 1, 1], [], []>} : vector<8x32xf32>, vector<32x96xf32>, vector<8x96xf32> -> vector<8x96xf32>
    %c0_16 = arith.constant 0 : index
    %c0_17 = arith.constant 0 : index
    %31 = vector.load %arg6[%c0_16, %c0_17] : memref<1x96xf32, #tpu.memory_space<vmem>>, vector<1x96xf32>
    %32 = vector.broadcast %31 : vector<1x96xf32> to vector<8x96xf32>
    %33 = arith.addf %30, %32 : vector<8x96xf32>
    %c0_18 = arith.constant 0 : index
    %c0_19 = arith.constant 0 : index
    %34 = vector.load %arg7[%c0_18, %c0_19] : memref<32x32xf32, #tpu.memory_space<vmem>>, vector<32x32xf32>
    %cst_20 = arith.constant 0.000000e+00 : f32
    %35 = vector.broadcast %cst_20 : f32 to vector<8x32xf32>
    %36 = vector.extract_strided_slice %33 {offsets = [0, 0], sizes = [8, 8], strides = [1, 1]} : vector<8x96xf32> to vector<8x8xf32>
    %37 = vector.extract_strided_slice %33 {offsets = [0, 32], sizes = [8, 8], strides = [1, 1]} : vector<8x96xf32> to vector<8x8xf32>
    %38 = vector.extract_strided_slice %33 {offsets = [0, 64], sizes = [8, 8], strides = [1, 1]} : vector<8x96xf32> to vector<8x8xf32>
    %39 = tpu.transpose %37, [1, 0] : vector<8x8xf32> -> vector<8x8xf32>
    %cst_21 = arith.constant dense<0.000000e+00> : vector<8x8xf32>
    %40 = tpu.matmul %36, %39, %cst_21 {dimension_numbers = #tpu.dot_dimension_numbers<[1], [0], [0], [1], [0, 0, 1, 1], [], []>} : vector<8x8xf32>, vector<8x8xf32>, vector<8x8xf32> -> vector<8x8xf32>
    %41 = arith.addf %40, %3 : vector<8x8xf32>
    %cst_22 = arith.constant dense<0xFF800000> : vector<8xf32>
    %42 = vector.multi_reduction <maximumf>, %41, %cst_22 [1] : vector<8x8xf32> to vector<8xf32>
    %43 = vector.shape_cast %42 : vector<8xf32> to vector<8x1xf32>
    %44 = vector.broadcast %43 : vector<8x1xf32> to vector<8x8xf32>
    %45 = arith.subf %41, %44 : vector<8x8xf32>
    %46 = math.exp %45 : vector<8x8xf32>
    %cst_23 = arith.constant dense<0.000000e+00> : vector<8xf32>
    %47 = vector.multi_reduction <add>, %46, %cst_23 [1] : vector<8x8xf32> to vector<8xf32>
    %48 = vector.shape_cast %47 : vector<8xf32> to vector<8x1xf32>
    %49 = tpu.reciprocal %48 : vector<8x1xf32> -> vector<8x1xf32>
    %50 = vector.broadcast %49 : vector<8x1xf32> to vector<8x8xf32>
    %51 = arith.mulf %46, %50 : vector<8x8xf32>
    %cst_24 = arith.constant dense<0.000000e+00> : vector<8x8xf32>
    %52 = tpu.matmul %51, %38, %cst_24 {dimension_numbers = #tpu.dot_dimension_numbers<[1], [0], [0], [1], [0, 0, 1, 1], [], []>} : vector<8x8xf32>, vector<8x8xf32>, vector<8x8xf32> -> vector<8x8xf32>
    %53 = vector.extract_strided_slice %34 {offsets = [0, 0], sizes = [8, 32], strides = [1, 1]} : vector<32x32xf32> to vector<8x32xf32>
    %cst_25 = arith.constant dense<0.000000e+00> : vector<8x32xf32>
    %54 = tpu.matmul %52, %53, %cst_25 {dimension_numbers = #tpu.dot_dimension_numbers<[1], [0], [0], [1], [0, 0, 1, 1], [], []>} : vector<8x8xf32>, vector<8x32xf32>, vector<8x32xf32> -> vector<8x32xf32>
    %55 = arith.addf %35, %54 : vector<8x32xf32>
    %56 = vector.extract_strided_slice %33 {offsets = [0, 8], sizes = [8, 8], strides = [1, 1]} : vector<8x96xf32> to vector<8x8xf32>
    %57 = vector.extract_strided_slice %33 {offsets = [0, 40], sizes = [8, 8], strides = [1, 1]} : vector<8x96xf32> to vector<8x8xf32>
    %58 = vector.extract_strided_slice %33 {offsets = [0, 72], sizes = [8, 8], strides = [1, 1]} : vector<8x96xf32> to vector<8x8xf32>
    %59 = tpu.transpose %57, [1, 0] : vector<8x8xf32> -> vector<8x8xf32>
    %cst_26 = arith.constant dense<0.000000e+00> : vector<8x8xf32>
    %60 = tpu.matmul %56, %59, %cst_26 {dimension_numbers = #tpu.dot_dimension_numbers<[1], [0], [0], [1], [0, 0, 1, 1], [], []>} : vector<8x8xf32>, vector<8x8xf32>, vector<8x8xf32> -> vector<8x8xf32>
    %61 = arith.addf %60, %3 : vector<8x8xf32>
    %cst_27 = arith.constant dense<0xFF800000> : vector<8xf32>
    %62 = vector.multi_reduction <maximumf>, %61, %cst_27 [1] : vector<8x8xf32> to vector<8xf32>
    %63 = vector.shape_cast %62 : vector<8xf32> to vector<8x1xf32>
    %64 = vector.broadcast %63 : vector<8x1xf32> to vector<8x8xf32>
    %65 = arith.subf %61, %64 : vector<8x8xf32>
    %66 = math.exp %65 : vector<8x8xf32>
    %cst_28 = arith.constant dense<0.000000e+00> : vector<8xf32>
    %67 = vector.multi_reduction <add>, %66, %cst_28 [1] : vector<8x8xf32> to vector<8xf32>
    %68 = vector.shape_cast %67 : vector<8xf32> to vector<8x1xf32>
    %69 = tpu.reciprocal %68 : vector<8x1xf32> -> vector<8x1xf32>
    %70 = vector.broadcast %69 : vector<8x1xf32> to vector<8x8xf32>
    %71 = arith.mulf %66, %70 : vector<8x8xf32>
    %cst_29 = arith.constant dense<0.000000e+00> : vector<8x8xf32>
    %72 = tpu.matmul %71, %58, %cst_29 {dimension_numbers = #tpu.dot_dimension_numbers<[1], [0], [0], [1], [0, 0, 1, 1], [], []>} : vector<8x8xf32>, vector<8x8xf32>, vector<8x8xf32> -> vector<8x8xf32>
    %73 = vector.extract_strided_slice %34 {offsets = [8, 0], sizes = [8, 32], strides = [1, 1]} : vector<32x32xf32> to vector<8x32xf32>
    %cst_30 = arith.constant dense<0.000000e+00> : vector<8x32xf32>
    %74 = tpu.matmul %72, %73, %cst_30 {dimension_numbers = #tpu.dot_dimension_numbers<[1], [0], [0], [1], [0, 0, 1, 1], [], []>} : vector<8x8xf32>, vector<8x32xf32>, vector<8x32xf32> -> vector<8x32xf32>
    %75 = arith.addf %55, %74 : vector<8x32xf32>
    %76 = vector.extract_strided_slice %33 {offsets = [0, 16], sizes = [8, 8], strides = [1, 1]} : vector<8x96xf32> to vector<8x8xf32>
    %77 = vector.extract_strided_slice %33 {offsets = [0, 48], sizes = [8, 8], strides = [1, 1]} : vector<8x96xf32> to vector<8x8xf32>
    %78 = vector.extract_strided_slice %33 {offsets = [0, 80], sizes = [8, 8], strides = [1, 1]} : vector<8x96xf32> to vector<8x8xf32>
    %79 = tpu.transpose %77, [1, 0] : vector<8x8xf32> -> vector<8x8xf32>
    %cst_31 = arith.constant dense<0.000000e+00> : vector<8x8xf32>
    %80 = tpu.matmul %76, %79, %cst_31 {dimension_numbers = #tpu.dot_dimension_numbers<[1], [0], [0], [1], [0, 0, 1, 1], [], []>} : vector<8x8xf32>, vector<8x8xf32>, vector<8x8xf32> -> vector<8x8xf32>
    %81 = arith.addf %80, %3 : vector<8x8xf32>
    %cst_32 = arith.constant dense<0xFF800000> : vector<8xf32>
    %82 = vector.multi_reduction <maximumf>, %81, %cst_32 [1] : vector<8x8xf32> to vector<8xf32>
    %83 = vector.shape_cast %82 : vector<8xf32> to vector<8x1xf32>
    %84 = vector.broadcast %83 : vector<8x1xf32> to vector<8x8xf32>
    %85 = arith.subf %81, %84 : vector<8x8xf32>
    %86 = math.exp %85 : vector<8x8xf32>
    %cst_33 = arith.constant dense<0.000000e+00> : vector<8xf32>
    %87 = vector.multi_reduction <add>, %86, %cst_33 [1] : vector<8x8xf32> to vector<8xf32>
    %88 = vector.shape_cast %87 : vector<8xf32> to vector<8x1xf32>
    %89 = tpu.reciprocal %88 : vector<8x1xf32> -> vector<8x1xf32>
    %90 = vector.broadcast %89 : vector<8x1xf32> to vector<8x8xf32>
    %91 = arith.mulf %86, %90 : vector<8x8xf32>
    %cst_34 = arith.constant dense<0.000000e+00> : vector<8x8xf32>
    %92 = tpu.matmul %91, %78, %cst_34 {dimension_numbers = #tpu.dot_dimension_numbers<[1], [0], [0], [1], [0, 0, 1, 1], [], []>} : vector<8x8xf32>, vector<8x8xf32>, vector<8x8xf32> -> vector<8x8xf32>
    %93 = vector.extract_strided_slice %34 {offsets = [16, 0], sizes = [8, 32], strides = [1, 1]} : vector<32x32xf32> to vector<8x32xf32>
    %cst_35 = arith.constant dense<0.000000e+00> : vector<8x32xf32>
    %94 = tpu.matmul %92, %93, %cst_35 {dimension_numbers = #tpu.dot_dimension_numbers<[1], [0], [0], [1], [0, 0, 1, 1], [], []>} : vector<8x8xf32>, vector<8x32xf32>, vector<8x32xf32> -> vector<8x32xf32>
    %95 = arith.addf %75, %94 : vector<8x32xf32>
    %96 = vector.extract_strided_slice %33 {offsets = [0, 24], sizes = [8, 8], strides = [1, 1]} : vector<8x96xf32> to vector<8x8xf32>
    %97 = vector.extract_strided_slice %33 {offsets = [0, 56], sizes = [8, 8], strides = [1, 1]} : vector<8x96xf32> to vector<8x8xf32>
    %98 = vector.extract_strided_slice %33 {offsets = [0, 88], sizes = [8, 8], strides = [1, 1]} : vector<8x96xf32> to vector<8x8xf32>
    %99 = tpu.transpose %97, [1, 0] : vector<8x8xf32> -> vector<8x8xf32>
    %cst_36 = arith.constant dense<0.000000e+00> : vector<8x8xf32>
    %100 = tpu.matmul %96, %99, %cst_36 {dimension_numbers = #tpu.dot_dimension_numbers<[1], [0], [0], [1], [0, 0, 1, 1], [], []>} : vector<8x8xf32>, vector<8x8xf32>, vector<8x8xf32> -> vector<8x8xf32>
    %101 = arith.addf %100, %3 : vector<8x8xf32>
    %cst_37 = arith.constant dense<0xFF800000> : vector<8xf32>
    %102 = vector.multi_reduction <maximumf>, %101, %cst_37 [1] : vector<8x8xf32> to vector<8xf32>
    %103 = vector.shape_cast %102 : vector<8xf32> to vector<8x1xf32>
    %104 = vector.broadcast %103 : vector<8x1xf32> to vector<8x8xf32>
    %105 = arith.subf %101, %104 : vector<8x8xf32>
    %106 = math.exp %105 : vector<8x8xf32>
    %cst_38 = arith.constant dense<0.000000e+00> : vector<8xf32>
    %107 = vector.multi_reduction <add>, %106, %cst_38 [1] : vector<8x8xf32> to vector<8xf32>
    %108 = vector.shape_cast %107 : vector<8xf32> to vector<8x1xf32>
    %109 = tpu.reciprocal %108 : vector<8x1xf32> -> vector<8x1xf32>
    %110 = vector.broadcast %109 : vector<8x1xf32> to vector<8x8xf32>
    %111 = arith.mulf %106, %110 : vector<8x8xf32>
    %cst_39 = arith.constant dense<0.000000e+00> : vector<8x8xf32>
    %112 = tpu.matmul %111, %98, %cst_39 {dimension_numbers = #tpu.dot_dimension_numbers<[1], [0], [0], [1], [0, 0, 1, 1], [], []>} : vector<8x8xf32>, vector<8x8xf32>, vector<8x8xf32> -> vector<8x8xf32>
    %113 = vector.extract_strided_slice %34 {offsets = [24, 0], sizes = [8, 32], strides = [1, 1]} : vector<32x32xf32> to vector<8x32xf32>
    %cst_40 = arith.constant dense<0.000000e+00> : vector<8x32xf32>
    %114 = tpu.matmul %112, %113, %cst_40 {dimension_numbers = #tpu.dot_dimension_numbers<[1], [0], [0], [1], [0, 0, 1, 1], [], []>} : vector<8x8xf32>, vector<8x32xf32>, vector<8x32xf32> -> vector<8x32xf32>
    %115 = arith.addf %95, %114 : vector<8x32xf32>
    %116 = arith.addf %1, %115 : vector<8x32xf32>
    %c0_41 = arith.constant 0 : index
    %c0_42 = arith.constant 0 : index
    %117 = vector.load %arg8[%c0_41, %c0_42] : memref<1x32xf32, #tpu.memory_space<vmem>>, vector<1x32xf32>
    %118 = vector.broadcast %117 : vector<1x32xf32> to vector<8x32xf32>
    %119 = arith.addf %116, %118 : vector<8x32xf32>
    %c0_43 = arith.constant 0 : index
    %c0_44 = arith.constant 0 : index
    %120 = vector.load %arg9[%c0_43, %c0_44] : memref<1x32xf32, #tpu.memory_space<vmem>>, vector<1x32xf32>
    %c0_45 = arith.constant 0 : index
    %c0_46 = arith.constant 0 : index
    %121 = vector.load %arg10[%c0_45, %c0_46] : memref<1x32xf32, #tpu.memory_space<vmem>>, vector<1x32xf32>
    %cst_47 = arith.constant dense<0.000000e+00> : vector<8xf32>
    %122 = vector.multi_reduction <add>, %119, %cst_47 [1] : vector<8x32xf32> to vector<8xf32>
    %123 = vector.shape_cast %122 : vector<8xf32> to vector<8x1xf32>
    %cst_48 = arith.constant 3.200000e+01 : f32
    %124 = vector.broadcast %cst_48 : f32 to vector<8x1xf32>
    %125 = arith.divf %123, %124 : vector<8x1xf32>
    %126 = vector.broadcast %125 : vector<8x1xf32> to vector<8x32xf32>
    %127 = arith.subf %119, %126 : vector<8x32xf32>
    %128 = arith.mulf %127, %127 : vector<8x32xf32>
    %cst_49 = arith.constant dense<0.000000e+00> : vector<8xf32>
    %129 = vector.multi_reduction <add>, %128, %cst_49 [1] : vector<8x32xf32> to vector<8xf32>
    %130 = vector.shape_cast %129 : vector<8xf32> to vector<8x1xf32>
    %cst_50 = arith.constant 0.0322580636 : f32
    %131 = vector.broadcast %cst_50 : f32 to vector<8x1xf32>
    %132 = arith.mulf %130, %131 : vector<8x1xf32>
    %133 = math.sqrt %132 : vector<8x1xf32>
    %cst_51 = arith.constant 9.99999997E-7 : f32
    %134 = vector.broadcast %cst_51 : f32 to vector<8x1xf32>
    %135 = arith.addf %133, %134 : vector<8x1xf32>
    %136 = tpu.reciprocal %135 : vector<8x1xf32> -> vector<8x1xf32>
    %137 = vector.broadcast %125 : vector<8x1xf32> to vector<8x32xf32>
    %138 = arith.subf %119, %137 : vector<8x32xf32>
    %139 = vector.broadcast %120 : vector<1x32xf32> to vector<8x32xf32>
    %140 = arith.mulf %139, %138 : vector<8x32xf32>
    %141 = vector.broadcast %136 : vector<8x1xf32> to vector<8x32xf32>
    %142 = arith.mulf %140, %141 : vector<8x32xf32>
    %143 = vector.broadcast %121 : vector<1x32xf32> to vector<8x32xf32>
    %144 = arith.addf %142, %143 : vector<8x32xf32>
    %c0_52 = arith.constant 0 : index
    %c0_53 = arith.constant 0 : index
    %145 = vector.load %arg11[%c0_52, %c0_53] : memref<32x64xf32, #tpu.memory_space<vmem>>, vector<32x64xf32>
    %cst_54 = arith.constant dense<0.000000e+00> : vector<8x64xf32>
    %146 = tpu.matmul %144, %145, %cst_54 {dimension_numbers = #tpu.dot_dimension_numbers<[1], [0], [0], [1], [0, 0, 1, 1], [], []>} : vector<8x32xf32>, vector<32x64xf32>, vector<8x64xf32> -> vector<8x64xf32>
    %c0_55 = arith.constant 0 : index
    %c0_56 = arith.constant 0 : index
    %147 = vector.load %arg12[%c0_55, %c0_56] : memref<1x64xf32, #tpu.memory_space<vmem>>, vector<1x64xf32>
    %148 = vector.broadcast %147 : vector<1x64xf32> to vector<8x64xf32>
    %149 = arith.addf %146, %148 : vector<8x64xf32>
    %cst_57 = arith.constant 0.000000e+00 : f32
    %150 = vector.broadcast %cst_57 : f32 to vector<8x64xf32>
    %151 = arith.maximumf %149, %150 : vector<8x64xf32>
    %c0_58 = arith.constant 0 : index
    %c0_59 = arith.constant 0 : index
    %152 = vector.load %arg13[%c0_58, %c0_59] : memref<64x32xf32, #tpu.memory_space<vmem>>, vector<64x32xf32>
    %cst_60 = arith.constant dense<0.000000e+00> : vector<8x32xf32>
    %153 = tpu.matmul %151, %152, %cst_60 {dimension_numbers = #tpu.dot_dimension_numbers<[1], [0], [0], [1], [0, 0, 1, 1], [], []>} : vector<8x64xf32>, vector<64x32xf32>, vector<8x32xf32> -> vector<8x32xf32>
    %154 = arith.addf %119, %153 : vector<8x32xf32>
    %c0_61 = arith.constant 0 : index
    %c0_62 = arith.constant 0 : index
    %155 = vector.load %arg14[%c0_61, %c0_62] : memref<1x32xf32, #tpu.memory_space<vmem>>, vector<1x32xf32>
    %156 = vector.broadcast %155 : vector<1x32xf32> to vector<8x32xf32>
    %157 = arith.addf %154, %156 : vector<8x32xf32>
    %c0_63 = arith.constant 0 : index
    %c0_64 = arith.constant 0 : index
    %c0_65 = arith.constant 0 : index
    %158 = vector.load %arg15[%c0_63, %c0_64, %c0_65] : memref<1x8x32xf32, #tpu.memory_space<vmem>>, vector<1x8x32xf32>
    %159 = vector.shape_cast %158 : vector<1x8x32xf32> to vector<8x32xf32>
    %160 = vector.shape_cast %157 : vector<8x32xf32> to vector<1x8x32xf32>
    tpu.vector_store %arg15[%c0_63, %c0_64, %c0_65], %160 {strides = array<i32>} : memref<1x8x32xf32, #tpu.memory_space<vmem>>, vector<1x8x32xf32>,
    return
  }
  func.func @transform_0(%arg0: i32) -> (i32, i32, i32) {
    %c0_i32 = arith.constant 0 : i32
    %c0_i32_0 = arith.constant 0 : i32
    %c0_i32_1 = arith.constant 0 : i32
    return %arg0, %c0_i32, %c0_i32_0 : i32, i32, i32
  }
  func.func @transform_1(%arg0: i32) -> (i32, i32, i32) {
    %c0_i32 = arith.constant 0 : i32
    %c0_i32_0 = arith.constant 0 : i32
    %c0_i32_1 = arith.constant 0 : i32
    return %arg0, %c0_i32, %c0_i32_0 : i32, i32, i32
  }
  func.func @transform_2(%arg0: i32) -> (i32, i32) {
    %c0_i32 = arith.constant 0 : i32
    %c0_i32_0 = arith.constant 0 : i32
    %c0_i32_1 = arith.constant 0 : i32
    return %c0_i32, %c0_i32_0 : i32, i32
  }
  func.func @transform_3(%arg0: i32) -> (i32, i32) {
    %c0_i32 = arith.constant 0 : i32
    %c0_i32_0 = arith.constant 0 : i32
    %c0_i32_1 = arith.constant 0 : i32
    return %c0_i32, %c0_i32_0 : i32, i32
  }
  func.func @transform_4(%arg0: i32) -> (i32, i32) {
    %c0_i32 = arith.constant 0 : i32
    %c0_i32_0 = arith.constant 0 : i32
    %c0_i32_1 = arith.constant 0 : i32
    return %c0_i32, %c0_i32_0 : i32, i32
  }
  func.func @transform_5(%arg0: i32) -> (i32, i32) {
    %c0_i32 = arith.constant 0 : i32
    %c0_i32_0 = arith.constant 0 : i32
    %c0_i32_1 = arith.constant 0 : i32
    return %c0_i32, %c0_i32_0 : i32, i32
  }
  func.func @transform_6(%arg0: i32) -> (i32, i32) {
    %c0_i32 = arith.constant 0 : i32
    %c0_i32_0 = arith.constant 0 : i32
    %c0_i32_1 = arith.constant 0 : i32
    return %c0_i32, %c0_i32_0 : i32, i32
  }
  func.func @transform_7(%arg0: i32) -> (i32, i32) {
    %c0_i32 = arith.constant 0 : i32
    %c0_i32_0 = arith.constant 0 : i32
    %c0_i32_1 = arith.constant 0 : i32
    return %c0_i32, %c0_i32_0 : i32, i32
  }
  func.func @transform_8(%arg0: i32) -> (i32, i32) {
    %c0_i32 = arith.constant 0 : i32
    %c0_i32_0 = arith.constant 0 : i32
    %c0_i32_1 = arith.constant 0 : i32
    return %c0_i32, %c0_i32_0 : i32, i32
  }
  func.func @transform_9(%arg0: i32) -> (i32, i32) {
    %c0_i32 = arith.constant 0 : i32
    %c0_i32_0 = arith.constant 0 : i32
    %c0_i32_1 = arith.constant 0 : i32
    return %c0_i32, %c0_i32_0 : i32, i32
  }
  func.func @transform_10(%arg0: i32) -> (i32, i32) {
    %c0_i32 = arith.constant 0 : i32
    %c0_i32_0 = arith.constant 0 : i32
    %c0_i32_1 = arith.constant 0 : i32
    return %c0_i32, %c0_i32_0 : i32, i32
  }
  func.func @transform_11(%arg0: i32) -> (i32, i32) {
    %c0_i32 = arith.constant 0 : i32
    %c0_i32_0 = arith.constant 0 : i32
    %c0_i32_1 = arith.constant 0 : i32
    return %c0_i32, %c0_i32_0 : i32, i32
  }
  func.func @transform_12(%arg0: i32) -> (i32, i32) {
    %c0_i32 = arith.constant 0 : i32
    %c0_i32_0 = arith.constant 0 : i32
    %c0_i32_1 = arith.constant 0 : i32
    return %c0_i32, %c0_i32_0 : i32, i32
  }
  func.func @transform_13(%arg0: i32) -> (i32, i32) {
    %c0_i32 = arith.constant 0 : i32
    %c0_i32_0 = arith.constant 0 : i32
    %c0_i32_1 = arith.constant 0 : i32
    return %c0_i32, %c0_i32_0 : i32, i32
  }
  func.func @transform_14(%arg0: i32) -> (i32, i32, i32) {
    %c0_i32 = arith.constant 0 : i32
    %c0_i32_0 = arith.constant 0 : i32
    %c0_i32_1 = arith.constant 0 : i32
    return %arg0, %c0_i32, %c0_i32_0 : i32, i32, i32
  }
}

</mosaic_0001>

<bundles_post_ra>
// kernel: tpu_custom_call.1
= control target key start
LH: loop header
LB: loop body
LE: loop exit
PB: predicated region body
PF: predicated region fallthrough
CT: control target
= control target key end

     0   :  { %s2005_s0 = inlined_call_operand.hbm [shape: f32[2,8,32], index: 0, kind: input, shape index: {}]   ;;  %s2006_s1 = inlined_call_operand.hbm [shape: f32[2,8,8], index: 1, kind: input, shape index: {}]   ;;  %s2007_s2 = inlined_call_operand.vmem [shape: f32[1,32], index: 2, kind: input, shape index: {}]   ;;  %s2008_s3 = inlined_call_operand.hbm [shape: f32[1,32], index: 3, kind: input, shape index: {}]   ;;  %s2009_s4 = inlined_call_operand.vmem [shape: f32[32,96], index: 4, kind: input, shape index: {}]   ;;  %s2010_s5 = inlined_call_operand.vmem [shape: f32[1,96], index: 5, kind: input, shape index: {}]   ;;  %s2011_s6 = inlined_call_operand.vmem [shape: f32[32,32], index: 6, kind: input, shape index: {}]   ;;  %s2012_s7 = inlined_call_operand.vmem [shape: f32[1,32], index: 7, kind: input, shape index: {}]   ;;  %s2013_s8 = inlined_call_operand.vmem [shape: f32[1,32], index: 8, kind: input, shape index: {}]   ;;  %s2014_s9 = inlined_call_operand.vmem [shape: f32[1,32], index: 9, kind: input, shape index: {}]   ;;  %s2015_s10 = inlined_call_operand.vmem [shape: f32[32,64], index: 10, kind: input, shape index: {}]   ;;  %s2016_s11 = inlined_call_operand.vmem [shape: f32[1,64], index: 11, kind: input, shape index: {}]   ;;  %s2017_s12 = inlined_call_operand.vmem [shape: f32[64,32], index: 12, kind: input, shape index: {}]   ;;  %s2018_s13 = inlined_call_operand.vmem [shape: f32[1,32], index: 13, kind: input, shape index: {}]   ;;  %s2019_s14 = inlined_call_operand.hbm [shape: f32[2,8,32], index: 14, kind: output, shape index: {}]  }
   0x1   :  { %2029 = sst [smem:[#allocation20_spill]] %s2008_s3 }
   0x2   :  { %2030 = sst [smem:[#allocation21_spill]] %s2013_s8 }
   0x3   :  { %2031 = sst [smem:[#allocation22_spill]] %s2014_s9 }
   0x4   :  { %2032 = sst [smem:[#allocation23_spill]] %s2016_s11 }
   0x5   :  { %2033 = sst [smem:[#allocation24_spill]] %s2018_s13 }
   0x6   :  { %2034 = sst [smem:[#allocation25_spill]] %s2019_s14 }
   0x7   :  { %19 = vsyncpa [#allocation3], 0 }
   0x8   :  { %21 = vsyncpa [#allocation3 + $0x1], 0 }
   0x9   :  { %22 = vsyncpa [#allocation6], 0 }
   0xa   :  { %24 = vsyncpa [#allocation6 + $0x1], 0 }
   0xb   :  { %25 = vsyncpa [#allocation4], 0 }
   0xc   :  { %27 = vsyncpa [#allocation4 + $0x1], 0  ;;  %s1678_s29 = smov 0   ;;  %s1680_s30 = smov 0  }
   0xd   :  { %s1682_s15 = smov 0   ;;  %s1684_s16 = smov 0  }
   0xe LB: > { %2035 = sst [smem:[#allocation13_spill]] %s1576_s29  ;;  %s1699_s17 = sadd.s32 4294967295, %s1588_s16   ;;  %s1588_s16 = sphi %s1684_s16, %s2058_s16   ;;  %s1584_s15 = sphi %s1682_s15, %s2060_s15   ;;  %s1580_s30 = sphi %s1680_s30, %s2062_s30   ;;  %s1576_s29 = sphi %s1678_s29, %s2061_s29  }
   0xf   : > { %2036 = sst [smem:[#allocation14_spill]] %s1584_s15  ;;  %s1280_s18 = sadd.s32 4294967294, %s1588_s16  }
  0x10   : > { %2037 = sst [smem:[#allocation15_spill]] %s1588_s16  ;;  %p53_p0 = scmp.ne.s32.totalorder %s1580_s30, %s1576_s29 }
  0x11   : > { %p54_p1 = scmp.eq.s32.totalorder %s1699_s17, 0  ;;  %p355_p2 = scmp.eq.s32.totalorder %s1699_s17, 1 }
  0x12   : > { %p361_p3 = scmp.eq.s32.totalorder %s1280_s18, 1  ;;  %p1281_p5 = scmp.ge.s32.totalorder %s1588_s16, 1 }
  0x13   : > { %p1708_p4 = por %p54_p1, %p53_p0  ;;  %p368_p7 = scmp.lt.s32.totalorder %s1588_s16, 3 }
  0x14   : > { %p1713_p6 = por %p361_p3, %p53_p0  ;;  %s2041_s3 = sld [smem:[#allocation20_spill]] }
  0x15   : > { %p1721_p8 = pnand %p1281_p5, %p368_p7  ;;  %s1590_s25 = smov [#allocation7]  }
  0x16   : > { %s2039_s20 = scalar_select %p1713_p6, 1, 0 }
  0x17   : > { %p1326_p10 = pneg %p1721_p8  ;;  %s385_s26 = sshll.u32 %s1590_s25, 4  ;;  %s386_s26 = int_to_ptr.vmem [resolvable:$true] %s385_s26 }
  0x18   : > { %2040 = sst [smem:[#allocation16_spill]] %s2039_s20  ;;  %s1731_s27 = sadd.s32 1, %s1588_s16  }
  0x19   : > { %p1327_p11 = pnand %p1326_p10, %p54_p1  ;;  %2043 = sst [smem:[#allocation17_spill]] %s1731_s27 }
  0x1a   : > { %s383_s23 = sshll.u32 %s2041_s3, 4  ;;  %s40_s28 = sadd.s32 1, %s1584_s15  ;;  %s384_s23 = int_to_ptr.hbm [resolvable:$true] %s383_s23 }
  0x1b   : > { %s37_s18 = ssub.s32 %s1588_s16, %s1731_s27  ;;  %p47_p13 = scmp.ne.s32.totalorder %s1584_s15, %s1580_s30 }
  0x1c   : > { %1329 = dma.hbm_to_vmem [thread:$0]  (!%p1327_p11), %s384_s23, 16, %s386_s26, [#allocation6]  }
  0x1d   : > { %p38_p12 = scmp.eq.s32.totalorder %s37_s18, 0  ;;  %p48_p0 = scmp.eq.s32.totalorder %s1588_s16, 0 }
  0x1e   : > { %p1342_p3 = scmp.lt.s32.totalorder %s1588_s16, 2  ;;  %p1745_p7 = por %p355_p2, %p47_p13 }
  0x1f   : > { %s1741_s21 = scalar_select %p38_p12, %s1584_s15, %s40_s28  }
  0x20   : > { %p49_p5 = por %p48_p0, %p47_p13  ;;  %s426_s25 = sand.u32 1, %s1584_s15  }
  0x21   : > { %2044 = sst [smem:[#allocation18_spill]] %s1741_s21  ;;  %s1285_s3 = sshll.u32 %s1588_s16, 3 }
  0x22   : > { %s2045_s22 = scalar_select %p1745_p7, 1, 0 }
  0x23   : > { %s1284_s20 = sshll.u32 %s426_s25, 3  ;;  %s434_s23 = scalar_lea.hbm %s2005_s0, %s1285_s3 }
  0x24   : > { %2046 = sst [smem:[#allocation19_spill]] %s2045_s22  ;;  %s436_s26 = sshll.u32 %s434_s23, 4  ;;  %s437_s26 = int_to_ptr.hbm [resolvable:$true] %s436_s26 }
  0x25   : > { %s430_s18 = scalar_lea.vmem [#allocation2], %s1284_s20  ;;  %p1756_p10 = pnand %p1342_p3, %p49_p5 }
  0x26   : > { %s438_s13 = sshll.u32 %s430_s18, 4  ;;  %s453_s15 = scalar_lea.hbm %s2006_s1, %s1285_s3  ;;  %s439_s13 = int_to_ptr.vmem [resolvable:$true] %s438_s13 }
  0x27   : > { %s445_s22 = sand.u32 1, %s1588_s16   ;;  %s427_s11 = scalar_lea.sflag [#allocation3], %s426_s25 }
  0x28   : > { %s1454_s29 = sshra.s32 %s437_s26, 4  ;;  %p1458_p11 = pneg %p1756_p10  ;;  %s1455_s29 = int_to_ptr.hbm [resolvable:$true] %s1454_s29 }
  0x29   : > { %s1456_s27 = scalar_lea.hbm %s1455_s29, 8  ;;  %s1461_s9 = scalar_lea.hbm %s2005_s0, 16 }
  0x2a   : > { %p1457_p2 = scmp.ne.s32.totalorder %s1455_s29, %s1456_s27  ;;  %p1462_p0 = scmp.lt.s32.totalorder %s1455_s29, %s2005_s0 }
  0x2b   : > { %p1463_p3 = scmp.lt.s32.totalorder %s1461_s9, %s1456_s27 }
  0x2c   : > { %p1459_p12 = pnand %p1458_p11, %p1457_p2 }
  0x2d   : > { %p1464_p5 = por %p1463_p3, %p1462_p0 }
  0x2e   : > { %p1460_p13 = pneg %p1459_p12 }
  0x30   : > { %p1465_p9 = pnand %p1464_p5, %p1460_p13 }
  0x32   : > { %1468 = shalt.err (!%p1465_p9)
}
  0x33   : > { %1333 = dma.hbm_to_vmem [thread:$0]  (!%p1756_p10), %s437_s26, 128, %s439_s13, %s427_s11  }
  0x34   : > { %s455_s3 = sshll.u32 %s453_s15, 4  ;;  %s449_s25 = scalar_lea.vmem [#allocation5], %s1284_s20  ;;  %s456_s3 = int_to_ptr.hbm [resolvable:$true] %s455_s3 }
  0x35   : > { %s457_s16 = sshll.u32 %s449_s25, 4  ;;  %s446_s8 = scalar_lea.sflag [#allocation6], %s445_s22  ;;  %s458_s16 = int_to_ptr.vmem [resolvable:$true] %s457_s16 }
  0x36   : > { %s1484_s23 = sshra.s32 %s456_s3, 4  ;;  %s1491_s27 = scalar_lea.hbm %s2006_s1, 16  ;;  %s1485_s23 = int_to_ptr.hbm [resolvable:$true] %s1484_s23 }
  0x37   : > { %s1486_s18 = scalar_lea.hbm %s1485_s23, 8  ;;  %p1492_p9 = scmp.lt.s32.totalorder %s1485_s23, %s2006_s1 }
  0x38   : > { %p1487_p2 = scmp.ne.s32.totalorder %s1485_s23, %s1486_s18  ;;  %p1493_p13 = scmp.lt.s32.totalorder %s1491_s27, %s1486_s18 }
  0x3a   : > { %p1489_p12 = pnand %p1487_p2, %p1458_p11  ;;  %p1494_p3 = por %p1493_p13, %p1492_p9 }
  0x3c   : > { %p1490_p0 = pneg %p1489_p12 }
  0x3e   : > { %p1495_p5 = pnand %p1494_p3, %p1490_p0 }
  0x40   : > { %1498 = shalt.err (!%p1495_p5)
}
  0x41   : > { %1336 = dma.hbm_to_vmem [thread:$0]  (!%p1756_p10), %s456_s3, 128, %s458_s16, %s446_s8  }
  0x42   : > { %466 = sbr.rel (%p1721_p8) target bundleno = 2375 (0x947), region = 76  ;;  %s1791_s13 = sand.u32 (!%p1721_p8), 1, %s1580_s30  }
  0x43   : > { %s1794_s15 = sshll.u32 (!%p1721_p8), %s1791_s13, 3  ;;  %s469_s20 = scalar_lea.sflag (!%p1721_p8), [#allocation3], %s1791_s13 }
  0x44   : > { %s472_s22 = scalar_lea.vmem (!%p1721_p8), [#allocation2], %s1794_s15 }
  0x47   : > { %1559 = dma.done.wait (%p1708_p4), %s469_s20, 128  }
  0x48   : > { %1561 = vsyncadd (%p1708_p4), %s469_s20, 4294967168  ;;  %s478_s8 = sand.u32 1, %s1699_s17   ;;  %s482_s24 = scalar_lea.vmem [#allocation5], %s1794_s15 }
  0x49   : > { %s479_s16 = scalar_lea.sflag [#allocation6], %s478_s8 }
  0x4a   : > { %1563 = dma.done.wait (%p1708_p4), %s479_s16, 128  }
  0x4b   : > { %1565 = vsyncadd (%p1708_p4), %s479_s16, 4294967168 }
  0x4c   : > { %1567 = dma.done.wait (%p54_p1), [#allocation6], 16  }
  0x4d   : > { %1569 = vsyncadd (%p54_p1), [#allocation6], 4294967280  ;;  %vm542_vm0 = vcmask 261120   ;;  %v1812_v0 = vld [vmem:[%s472_s22] sm:$0xff]  ;;  %v1591_v2 = vmov 32.0   ;;  %v599_v14 = vld [vmem:[%s2009_s4 + $0x18] sm:$0xff] }
  0x4e   : > { %v543_v1 = vsel %vm542_vm0, %v1812_v0, 0.0  ;;  %1398 = vrcp.f32 %v1591_v2  ;;  %v598_v15 = vld [vmem:[%s2009_s4 + $0x10] sm:$0xff]  ;;  %619 = vmatpush.msra.mxu0 %v599_v14  ;;  %v597_v16 = vld [vmem:[%s2009_s4 + $0x8] sm:$0xff]  ;;  %v596_v17 = vld [vmem:[%s2009_s4] sm:$0xff]  ;;  %s1592_s11 = smov 88   ;;  %s1593_s20 = smov 96  }
  0x4f   : > { %544 = vadd.xlane.f32.xlu0 %v543_v1  ;;  %v1390_v35 = vld [vmem:[%s2007_s2] ss:$0 sm:$0xff]  ;;  %s1594_s22 = smov 72   ;;  %s1595_s8 = smov 80   ;;  %vm634_vm8 = vcmask 64512   ;;  %v1857_v54 = vld [vmem:[%s482_s24] sm:$0xff] }
  0x50   : > { %620 = vmatpush.msra.mxu0 %v598_v15  ;;  %v1391_v42 = vld [vmem:[#allocation7] ss:$0 sm:$0xff]  ;;  %s1596_s26 = smov 64   ;;  %s1597_s28 = smov 120  }
  0x51   : > { %v1392_v46 = vld [vmem:[%s2010_s5] ss:$0 sm:$0xff]  ;;  %s1598_s24 = smov 104   ;;  %s1599_s21 = smov 112  }
  0x52   : > { %621 = vmatpush.msra.mxu0 %v597_v16  ;;  %v627_v49 = vld [vmem:[%s2011_s6] sm:$0xff]  ;;  %s1600_s3 = smov 48   ;;  %s1601_s25 = smov 40  }
  0x53   : > { %828 = vmatpush.msra.mxu3 %v627_v49  ;;  %s1602_s23 = smov 56   ;;  %s2048_s19 = sld [smem:[#allocation21_spill]] }
  0x54   : > { %v1399_v3 = vpop.eup %1398  ;;  %622 = vmatpush.msra.mxu0 %v596_v17  ;;  %s2050_s14 = sld [smem:[#allocation23_spill]] }
  0x55   : > { %v547_v4 = vmul.f32 32.0, %v1399_v3  ;;  %vm551_vm1 = vweird.f32 %v1399_v3 }
  0x57   : > { %v548_v5 = vsub.f32 1.0, %v547_v4 }
  0x59   : > { %v549_v6 = vmul.f32 %v1399_v3, %v548_v5 }
  0x5b   : > { %v550_v7 = vadd.f32 %v1399_v3, %v549_v6 }
  0x5d   : > { %v1816_v8 = vsel %vm551_vm1, %v1399_v3, %v550_v7 }
  0xc2   : > { %v545_v9 = vpop.xlane.xlu0 %544 }
  0xc3   : > { %v553_v10 = vmul.f32 %v1816_v8, %v545_v9 }
  0xc5   : > { %v554_v11 = vsub.f32 %v1812_v0, %v553_v10 }
  0xc7   : > { %v555_v12 = vmul.f32 %v554_v11, %v554_v11  ;;  %v590_v40 = vmul.f32 %v1390_v35, %v554_v11 }
  0xc9   : > { %v556_v13 = vsel %vm542_vm0, %v555_v12, 0.0 }
  0xca   : > { %557 = vadd.xlane.f32.xlu0 %v556_v13 }
 0x13d   : > { %v558_v18 = vpop.xlane.xlu0 %557 }
 0x13e   : > { %v559_v19 = vmul.f32 0.032258064, %v558_v18 }
 0x140   : > { %1400 = vrsqrt.f32 %v559_v19  ;;  %vm567_vm2 = vcmp.eq.f32.partialorder %v559_v19, inf  ;;  %v570_v27 = vand.u32 2147483648, %v559_v19  ;;  %vm569_vm3 = vcmp.eq.f32.partialorder %v559_v19, 0.0 }
 0x146   : > { %v1401_v20 = vpop.eup %1400 }
 0x147   : > { %v561_v21 = vmul.f32 %v1401_v20, %v559_v19 }
 0x149   : > { %v562_v22 = vmul.f32 %v1401_v20, %v561_v21 }
 0x14b   : > { %v563_v23 = vmul.f32 0.5, %v562_v22 }
 0x14d   : > { %v564_v24 = vsub.f32 1.5, %v563_v23 }
 0x14f   : > { %v565_v25 = vmul.f32 %v1401_v20, %v564_v24 }
 0x151   : > { %v566_v26 = vmul.f32 %v565_v25, %v559_v19 }
 0x153   : > { %v568_v28 = vsel %vm567_vm2, %v559_v19, %v566_v26 }
 0x154   : > { %v571_v29 = vsel %vm569_vm3, %v570_v27, %v568_v28 }
 0x155   : > { %v572_v30 = vadd.f32 1e-06, %v571_v29 }
 0x157   : > { %1402 = vrcp.f32 %v572_v30  ;;  %v584_v34 = vand.u32 2147483648, %v572_v30  ;;  %v582_v37 = vand.u32 2147483647, %v572_v30  ;;  %vm578_vm5 = vweird.f32 %v572_v30 }
 0x159   : > { %v585_v39 = vor.u32 1.1754944e-38, %v584_v34  ;;  %vm583_vm7 = vcmp.eq.f32.partialorder %v582_v37, 8.507059e+37 }
 0x15d   : > { %v1403_v31 = vpop.eup %1402 }
 0x15e   : > { %v574_v32 = vmul.f32 %v1403_v31, %v572_v30  ;;  %vm579_vm4 = vweird.f32 %v1403_v31 }
 0x15f   : > { %vm580_vm6 = vmor %vm578_vm5, %vm579_vm4 }
 0x160   : > { %v575_v33 = vsub.f32 1.0, %v574_v32 }
 0x162   : > { %v576_v36 = vmul.f32 %v1403_v31, %v575_v33 }
 0x164   : > { %v577_v38 = vadd.f32 %v1403_v31, %v576_v36 }
 0x166   : > { %v581_v41 = vsel %vm580_vm6, %v1403_v31, %v577_v38 }
 0x167   : > { %v586_v43 = vsel %vm583_vm7, %v585_v39, %v581_v41 }
 0x168   : > { %v591_v44 = vmul.f32 %v590_v40, %v586_v43 }
 0x16a   : > { %v595_v45 = vadd.f32 %v1391_v42, %v591_v44 }
 0x16c   : > { %1293 = vmatmul.msk.f32.vlgmr.msra.gmra.mxu0 %vm542_vm0, %v595_v45 }
 0x1e9   : > { %v624_v47 = vpop.f32.mrf.mxu0 }
 0x1ea   : > { %v1840_v48 = vadd.f32 %v1392_v46, %v624_v47 }
 0x1ec   : > { %711 = vrot.lane.b32.xlu0 %v1840_v48, %s1592_s11  ;;  %632 = vrot.lane.b32.xlu1 %v1840_v48, %s1593_s20  ;;  %s1313_s11 = sshll.u32 %s1699_s17, 3  ;;  %s1163_s17 = scalar_lea.sflag [#allocation4], %s1791_s13 }
 0x1f4   : > { %937 = vrot.lane.b32.xlu0 %v1840_v48, %s1594_s22 }
 0x1fc   : > { %835 = vrot.lane.b32.xlu0 %v1840_v48, %s1595_s8  ;;  %s2051_s8 = sld [smem:[#allocation25_spill]] }
 0x202   : > { %s1173_s16 = scalar_lea.hbm %s2051_s8, %s1313_s11 }
 0x25e   : > { %v712_v50 = vpop.permute.xlu0 %711  ;;  %v633_v51 = vpop.permute.xlu1 %632 }
 0x25f   : > { %1294 = vmatpush.xpose.msk.msra.mxu1 %vm634_vm8, %v633_v51  ;;  %1297 = vmatpush.xpose.msk.msrb.mxu0 %vm634_vm8, %v712_v50 }
 0x262   : > { %1295 = vmatmul.msk.f32.vlgmr.msra.gmra.mxu1 %vm634_vm8, %v1840_v48 }
 0x266   : > { %v938_v52 = vpop.permute.xlu0 %937 }
 0x267   : > { %1306 = vmatpush.xpose.msk.msrb.mxu3 %vm634_vm8, %v938_v52 }
 0x26e   : > { %v836_v53 = vpop.permute.xlu0 %835 }
 0x26f   : > { %1302 = vmatpush.xpose.msk.msra.mxu0 %vm634_vm8, %v836_v53 }
 0x2df   : > { %v656_v55 = vpop.f32.mrf.mxu1 }
 0x2e0   : > { %v657_v56 = vadd.f32 %v656_v55, %v1857_v54 }
 0x2e2   : > { %v659_v57 = vsel %vm634_vm8, %v657_v56, -inf }
 0x2e3   : > { %660 = vmax.xlane.f32.xlu1 %v659_v57 }
 0x356   : > { %v661_v58 = vpop.xlane.xlu1 %660 }
 0x357   : > { %v662_v59 = vsub.f32 %v657_v56, %v661_v58 }
 0x359   : > { %v663_v60 = vmul.f32 1.442695, %v662_v59 }
 0x35b   : > { %1404 = vpow2.f32 %v663_v60 }
 0x361   : > { %v1405_v61 = vpop.eup %1404 }
 0x362   : > { %v665_v62 = vsel %vm634_vm8, %v1405_v61, 0.0 }
 0x363   : > { %666 = vadd.xlane.f32.xlu2 %v665_v62 }
 0x37b   : > { %683 = vrot.lane.b32.xlu2 %v1840_v48, %s1596_s26 }
 0x383   : > { %709 = vrot.lane.b32.xlu2 %v1840_v48, %s1597_s28  ;;  %s2052_s28 = sld [smem:[#allocation24_spill]] }
 0x38b   : > { %935 = vrot.lane.b32.xlu2 %v1840_v48, %s1598_s24  ;;  %s2049_s24 = sld [smem:[#allocation22_spill]] }
 0x393   : > { %833 = vrot.lane.b32.xlu2 %v1840_v48, %s1599_s21  ;;  %s537_s21 = scalar_lea.vmem [#allocation8], %s1794_s15  ;;  %s1534_s15 = scalar_lea.hbm %s2051_s8, 16 }
 0x3d6   : > { %v667_v63 = vpop.xlane.xlu2 %666 }
 0x3d7   : > { %1406 = vrcp.f32 %v667_v63  ;;  %v679_v5 = vand.u32 2147483648, %v667_v63  ;;  %v677_v7 = vand.u32 2147483647, %v667_v63  ;;  %vm673_vm10 = vweird.f32 %v667_v63 }
 0x3d9   : > { %v680_v10 = vor.u32 1.1754944e-38, %v679_v5  ;;  %vm678_vm12 = vcmp.eq.f32.partialorder %v677_v7, 8.507059e+37 }
 0x3dd   : > { %v1407_v1 = vpop.eup %1406 }
 0x3de   : > { %v669_v2 = vmul.f32 %v1407_v1, %v667_v63  ;;  %v684_v3 = vpop.permute.xlu2 %683  ;;  %vm674_vm9 = vweird.f32 %v1407_v1 }
 0x3df   : > { %704 = vmatpush.msra.mxu2 %v684_v3  ;;  %vm675_vm11 = vmor %vm673_vm10, %vm674_vm9 }
 0x3e0   : > { %v670_v4 = vsub.f32 1.0, %v669_v2 }
 0x3e2   : > { %v671_v6 = vmul.f32 %v1407_v1, %v670_v4 }
 0x3e4   : > { %v672_v9 = vadd.f32 %v1407_v1, %v671_v6 }
 0x3e6   : > { %v710_v11 = vpop.permute.xlu2 %709  ;;  %v676_v12 = vsel %vm675_vm11, %v1407_v1, %v672_v9 }
 0x3e7   : > { %1298 = vmatmul.msk.f32.vlgmr.msrb.gmra.mxu0 %vm634_vm8, %v710_v11  ;;  %v681_v13 = vsel %vm678_vm12, %v680_v10, %v676_v12 }
 0x3e8   : > { %v682_v14 = vmul.f32 %v1405_v61, %v681_v13 }
 0x3ea   : > { %1296 = vmatmul.msk.f32.vlgmr.msra.gmra.mxu2 %vm634_vm8, %v682_v14 }
 0x3ee   : > { %v936_v15 = vpop.permute.xlu2 %935 }
 0x3f6   : > { %v834_v16 = vpop.permute.xlu2 %833 }
 0x3f7   : > { %1303 = vmatmul.msk.f32.vlgmr.msra.gmra.mxu0 %vm634_vm8, %v834_v16 }
 0x464   : > { %v734_v17 = vpop.f32.mrf.mxu0 }
 0x465   : > { %v735_v18 = vadd.f32 %v734_v17, %v1857_v54 }
 0x467   : > { %v737_v19 = vsel %vm634_vm8, %v735_v18, -inf }
 0x468   : > { %738 = vmax.xlane.f32.xlu1 %v737_v19 }
 0x46d   : > { %v706_v20 = vpop.f32.mrf.mxu2 }
 0x46e   : > { %1301 = vmatmul.msk.f32.vlgmr.msra.gmra.mxu3 %vm634_vm8, %v706_v20  ;;  %v630_v20 = vld [vmem:[%s2011_s6 + $0x18] sm:$0xff] }
 0x474   : > { %v858_v21 = vpop.f32.mrf.mxu0 }
 0x475   : > { %v859_v22 = vadd.f32 %v858_v21, %v1857_v54  ;;  %v628_v21 = vld [vmem:[%s2011_s6 + $0x8] sm:$0xff] }
 0x476   : > { %1307 = vmatmul.msk.f32.vlgmr.msrb.gmra.mxu3 %vm634_vm8, %v936_v15  ;;  %805 = vmatpush.msrb.mxu1 %v628_v21  ;;  %v1397_v21 = vld [vmem:[%s2052_s28] ss:$0 sm:$0xff] }
 0x477   : > { %v861_v23 = vsel %vm634_vm8, %v859_v22, -inf }
 0x478   : > { %862 = vmax.xlane.f32.xlu0 %v861_v23 }
 0x48c   : > { %885 = vrot.lane.b32.xlu0 %v1840_v48, %s1600_s3  ;;  %s1175_s3 = sshll.u32 %s537_s21, 4  ;;  %s1176_s3 = int_to_ptr.vmem [resolvable:$true] %s1175_s3 }
 0x4db   : > { %v739_v24 = vpop.xlane.xlu1 %738 }
 0x4dc   : > { %v740_v25 = vsub.f32 %v735_v18, %v739_v24 }
 0x4de   : > { %v741_v26 = vmul.f32 1.442695, %v740_v25 }
 0x4e0   : > { %1408 = vpow2.f32 %v741_v26 }
 0x4e6   : > { %v1876_v27 = vpop.eup %1408 }
 0x4e7   : > { %v743_v28 = vsel %vm634_vm8, %v1876_v27, 0.0 }
 0x4e8   : > { %744 = vadd.xlane.f32.xlu1 %v743_v28 }
 0x4eb   : > { %v863_v29 = vpop.xlane.xlu0 %862 }
 0x4ec   : > { %v864_v30 = vsub.f32 %v859_v22, %v863_v29  ;;  %v629_v22 = vld [vmem:[%s2011_s6 + $0x10] sm:$0xff] }
 0x4ed   : > { %929 = vmatpush.msra.mxu1 %v629_v22 }
 0x4ee   : > { %v865_v31 = vmul.f32 1.442695, %v864_v30 }
 0x4f0   : > { %1410 = vpow2.f32 %v865_v31 }
 0x4f1   : > { %v1880_v32 = vpop.f32.mrf.mxu3 }
 0x4f6   : > { %v1882_v33 = vpop.eup %1410 }
 0x4f7   : > { %v867_v34 = vsel %vm634_vm8, %v1882_v33, 0.0 }
 0x4f8   : > { %868 = vadd.xlane.f32.xlu1 %v867_v34 }
 0x4f9   : > { %v960_v35 = vpop.f32.mrf.mxu3 }
 0x4fa   : > { %v961_v36 = vadd.f32 %v960_v35, %v1857_v54 }
 0x4fc   : > { %v963_v37 = vsel %vm634_vm8, %v961_v36, -inf }
 0x4fd   : > { %964 = vmax.xlane.f32.xlu2 %v963_v37 }
 0x4fe   : > { %v886_v15 = vpop.permute.xlu0 %885 }
 0x515   : > { %987 = vrot.lane.b32.xlu2 %v1840_v48, %s1601_s25  ;;  %s1177_s25 = sshll.u32 %s1173_s16, 4  ;;  %s1178_s25 = int_to_ptr.hbm [resolvable:$true] %s1177_s25 }
 0x55b   : > { %v745_v44 = vpop.xlane.xlu1 %744 }
 0x55c   : > { %v757_v62 = vand.u32 2147483648, %v745_v44  ;;  %vm751_vm2 = vweird.f32 %v745_v44  ;;  %v755_v1 = vand.u32 2147483647, %v745_v44 }
 0x55e   : > { %v758_v7 = vor.u32 1.1754944e-38, %v757_v62  ;;  %vm756_vm5 = vcmp.eq.f32.partialorder %v755_v1, 8.507059e+37 }
 0x56b   : > { %v869_v45 = vpop.xlane.xlu1 %868 }
 0x56c   : > { %v881_v11 = vand.u32 2147483648, %v869_v45  ;;  %vm875_vm7 = vweird.f32 %v869_v45  ;;  %v879_v12 = vand.u32 2147483647, %v869_v45 }
 0x56e   : > { %v882_v17 = vor.u32 1.1754944e-38, %v881_v11  ;;  %vm880_vm10 = vcmp.eq.f32.partialorder %v879_v12, 8.507059e+37 }
 0x570   : > { %v965_v38 = vpop.xlane.xlu2 %964 }
 0x571   : > { %v966_v39 = vsub.f32 %v961_v36, %v965_v38 }
 0x573   : > { %v967_v40 = vmul.f32 1.442695, %v966_v39 }
 0x575   : > { %1412 = vpow2.f32 %v967_v40 }
 0x576   : > { %1414 = vrcp.f32 %v745_v44 }
 0x577   : > { %1416 = vrcp.f32 %v869_v45 }
 0x578   : > { %v988_v41 = vpop.permute.xlu2 %987 }
 0x579   : > { %1008 = vmatpush.msrb.mxu0 %v988_v41  ;;  %v1094_v41 = vld [vmem:[%s2015_s10 + $0x18] sm:$0xff] }
 0x57b   : > { %v1413_v42 = vpop.eup %1412 }
 0x57c   : > { %v969_v43 = vsel %vm634_vm8, %v1413_v42, 0.0  ;;  %v1415_v46 = vpop.eup %1414 }
 0x57d   : > { %970 = vadd.xlane.f32.xlu1 %v969_v43  ;;  %v747_v49 = vmul.f32 %v1415_v46, %v745_v44  ;;  %v1417_v50 = vpop.eup %1416  ;;  %vm752_vm14 = vweird.f32 %v1415_v46 }
 0x57e   : > { %v871_v55 = vmul.f32 %v1417_v50, %v869_v45  ;;  %vm753_vm4 = vmor %vm751_vm2, %vm752_vm14  ;;  %vm876_vm6 = vweird.f32 %v1417_v50 }
 0x57f   : > { %v748_v51 = vsub.f32 1.0, %v747_v49  ;;  %vm877_vm9 = vmor %vm875_vm7, %vm876_vm6 }
 0x580   : > { %v872_v60 = vsub.f32 1.0, %v871_v55  ;;  %v1127_v55 = vld [vmem:[%s2017_s12 + $0x20] sm:$0xff] }
 0x581   : > { %v749_v54 = vmul.f32 %v1415_v46, %v748_v51  ;;  %v1129_v51 = vld [vmem:[%s2017_s12 + $0x30] sm:$0xff] }
 0x582   : > { %v873_v4 = vmul.f32 %v1417_v50, %v872_v60 }
 0x584   : > { %v874_v10 = vadd.f32 %v1417_v50, %v873_v4 }
 0x586   : > { %v878_v16 = vsel %vm877_vm9, %v1417_v50, %v874_v10  ;;  %v1130_v50 = vld [vmem:[%s2017_s12 + $0x38] sm:$0xff]  ;;  %v1395_v10 = vld [vmem:[%s2049_s24] ss:$0 sm:$0xff] }
 0x587   : > { %v883_v18 = vsel %vm880_vm10, %v882_v17, %v878_v16  ;;  %1143 = vmatpush.msra.mxu3 %v1130_v50  ;;  %v1123_v16 = vld [vmem:[%s2017_s12] sm:$0xff] }
 0x588   : > { %v884_v19 = vmul.f32 %v1882_v33, %v883_v18  ;;  %v1393_v33 = vld [vmem:[%s2012_s7] ss:$0 sm:$0xff] }
 0x589   : > { %1144 = vmatpush.msra.mxu3 %v1129_v51  ;;  %v1396_v17 = vld [vmem:[%s2050_s14] ss:$0 sm:$0xff] }
 0x596   : > { %761 = vrot.lane.b32.xlu1 %v1840_v48, %s1602_s23  ;;  %v750_v48 = vadd.f32 %v1415_v46, %v749_v54  ;;  %s1528_s23 = sshra.s32 %s1178_s25, 4  ;;  %s1529_s23 = int_to_ptr.hbm [resolvable:$true] %s1528_s23 }
 0x597   : > { %s1530_s18 = scalar_lea.hbm %s1529_s23, 8  ;;  %p1535_p10 = scmp.lt.s32.totalorder %s1529_s23, %s2051_s8 }
 0x598   : > { %v754_v6 = vsel %vm753_vm4, %v1415_v46, %v750_v48  ;;  %p1531_p1 = scmp.ne.s32.totalorder %s1529_s23, %s1530_s18  ;;  %p1536_p11 = scmp.lt.s32.totalorder %s1534_s15, %s1530_s18 }
 0x599   : > { %v759_v9 = vsel %vm756_vm5, %v758_v7, %v754_v6 }
 0x59a   : > { %v760_v14 = vmul.f32 %v1876_v27, %v759_v9  ;;  %p1532_p4 = pnand %p1531_p1, %p1745_p7  ;;  %p1537_p2 = por %p1536_p11, %p1535_p10 }
 0x59c   : > { %p1533_p8 = pneg %p1532_p4 }
 0x59e   : > { %p1538_p12 = pnand %p1537_p2, %p1533_p8 }
 0x5f0   : > { %v971_v47 = vpop.xlane.xlu1 %970 }
 0x5f1   : > { %1418 = vrcp.f32 %v971_v47  ;;  %v983_v57 = vand.u32 2147483648, %v971_v47  ;;  %v981_v59 = vand.u32 2147483647, %v971_v47  ;;  %vm977_vm15 = vweird.f32 %v971_v47 }
 0x5f3   : > { %v984_v63 = vor.u32 1.1754944e-38, %v983_v57  ;;  %vm982_vm3 = vcmp.eq.f32.partialorder %v981_v59, 8.507059e+37 }
 0x5f7   : > { %v1419_v52 = vpop.eup %1418 }
 0x5f8   : > { %v973_v53 = vmul.f32 %v1419_v52, %v971_v47  ;;  %vm978_vm13 = vweird.f32 %v1419_v52 }
 0x5f9   : > { %vm979_vm1 = vmor %vm977_vm15, %vm978_vm13 }
 0x5fa   : > { %v974_v56 = vsub.f32 1.0, %v973_v53  ;;  %v1128_v53 = vld [vmem:[%s2017_s12 + $0x28] sm:$0xff] }
 0x5fb   : > { %1145 = vmatpush.msra.mxu3 %v1128_v53 }
 0x5fc   : > { %v975_v58 = vmul.f32 %v1419_v52, %v974_v56 }
 0x5fd   : > { %1146 = vmatpush.msra.mxu3 %v1127_v55 }
 0x5fe   : > { %v976_v61 = vadd.f32 %v1419_v52, %v975_v58  ;;  %v1126_v58 = vld [vmem:[%s2017_s12 + $0x18] sm:$0xff] }
 0x5ff   : > { %1147 = vmatpush.msra.mxu3 %v1126_v58 }
 0x600   : > { %v980_v2 = vsel %vm979_vm1, %v1419_v52, %v976_v61  ;;  %vm1131_vm1 = vcmask 523264  }
 0x601   : > { %v985_v3 = vsel %vm982_vm3, %v984_v63, %v980_v2  ;;  %v1394_v2 = vld [vmem:[%s2048_s19] ss:$0 sm:$0xff] }
 0x602   : > { %v986_v5 = vmul.f32 %v1413_v42, %v985_v3  ;;  %v1092_v42 = vld [vmem:[%s2015_s10 + $0x8] sm:$0xff] }
 0x604   : > { %1308 = vmatmul.msk.f32.vlgmr.msrb.gmra.mxu0 %vm634_vm8, %v986_v5 }
 0x608   : > { %v762_v13 = vpop.permute.xlu1 %761 }
 0x609   : > { %782 = vmatpush.msrb.mxu2 %v762_v13 }
 0x60a   : > { %1299 = vmatmul.msk.f32.vlgmr.msrb.gmra.mxu2 %vm634_vm8, %v760_v14  ;;  %v1125_v14 = vld [vmem:[%s2017_s12 + $0x10] sm:$0xff] }
 0x60b   : > { %906 = vmatpush.msra.mxu2 %v886_v15  ;;  %1148 = vmatpush.msra.mxu3 %v1125_v14  ;;  %v1124_v15 = vld [vmem:[%s2017_s12 + $0x8] sm:$0xff] }
 0x60d   : > { %1031 = vmatpush.msrb.mxu2 %v630_v20  ;;  %1149 = vmatpush.msra.mxu3 %v1124_v15 }
 0x60f   : > { %1150 = vmatpush.msra.mxu3 %v1123_v16 }
 0x612   : > { %1304 = vmatmul.msk.f32.vlgmr.msra.gmra.mxu2 %vm634_vm8, %v884_v19 }
 0x681   : > { %v1010_v23 = vpop.f32.mrf.mxu0 }
 0x682   : > { %1309 = vmatmul.msk.f32.vlgmr.msrb.gmra.mxu2 %vm634_vm8, %v1010_v23 }
 0x68d   : > { %v784_v24 = vpop.f32.mrf.mxu2 }
 0x68e   : > { %1300 = vmatmul.msk.f32.vlgmr.msrb.gmra.mxu1 %vm634_vm8, %v784_v24 }
 0x68f   : > { %1114 = vmatpush.msrb.mxu1 %v1094_v41 }
 0x695   : > { %v908_v25 = vpop.f32.mrf.mxu2 }
 0x696   : > { %1305 = vmatmul.msk.f32.vlgmr.msra.gmra.mxu1 %vm634_vm8, %v908_v25 }
 0x705   : > { %v1033_v30 = vpop.f32.mrf.mxu2 }
 0x70b   : > { %v807_v26 = vpop.f32.mrf.mxu1 }
 0x70c   : > { %v831_v27 = vadd.f32 %v1880_v32, %v807_v26 }
 0x713   : > { %v931_v28 = vpop.f32.mrf.mxu1 }
 0x714   : > { %v934_v29 = vadd.f32 %v931_v28, %v831_v27 }
 0x716   : > { %v1036_v31 = vadd.f32 %v1033_v30, %v934_v29 }
 0x718   : > { %v1037_v34 = vadd.f32 %v1036_v31, %v1812_v0  ;;  %v1093_v0 = vld [vmem:[%s2015_s10 + $0x10] sm:$0xff] }
 0x719   : > { %1115 = vmatpush.msrb.mxu1 %v1093_v0 }
 0x71a   : > { %v1913_v35 = vadd.f32 %v1393_v33, %v1037_v34 }
 0x71b   : > { %1116 = vmatpush.msrb.mxu1 %v1092_v42 }
 0x71c   : > { %v1045_v36 = vsel %vm542_vm0, %v1913_v35, 0.0 }
 0x71d   : > { %1046 = vadd.xlane.f32.xlu1 %v1045_v36 }
 0x790   : > { %v1047_v37 = vpop.xlane.xlu1 %1046 }
 0x791   : > { %v1048_v38 = vmul.f32 %v1047_v37, %v1816_v8  ;;  %v1091_v8 = vld [vmem:[%s2015_s10] sm:$0xff] }
 0x792   : > { %1117 = vmatpush.msrb.mxu1 %v1091_v8 }
 0x793   : > { %v1049_v32 = vsub.f32 %v1913_v35, %v1048_v38 }
 0x795   : > { %v1050_v39 = vmul.f32 %v1049_v32, %v1049_v32  ;;  %v1085_v7 = vmul.f32 %v1394_v2, %v1049_v32 }
 0x797   : > { %v1051_v40 = vsel %vm542_vm0, %v1050_v39, 0.0 }
 0x798   : > { %1052 = vadd.xlane.f32.xlu0 %v1051_v40 }
 0x80b   : > { %v1053_v43 = vpop.xlane.xlu0 %1052 }
 0x80c   : > { %v1054_v44 = vmul.f32 0.032258064, %v1053_v43 }
 0x80e   : > { %1420 = vrsqrt.f32 %v1054_v44  ;;  %vm1062_vm8 = vcmp.eq.f32.partialorder %v1054_v44, inf  ;;  %v1065_v57 = vand.u32 2147483648, %v1054_v44  ;;  %vm1064_vm11 = vcmp.eq.f32.partialorder %v1054_v44, 0.0 }
 0x814   : > { %v1421_v45 = vpop.eup %1420 }
 0x815   : > { %v1056_v46 = vmul.f32 %v1421_v45, %v1054_v44 }
 0x817   : > { %v1057_v47 = vmul.f32 %v1421_v45, %v1056_v46 }
 0x819   : > { %v1058_v49 = vmul.f32 0.5, %v1057_v47 }
 0x81b   : > { %v1059_v52 = vsub.f32 1.5, %v1058_v49 }
 0x81d   : > { %v1060_v54 = vmul.f32 %v1421_v45, %v1059_v52 }
 0x81f   : > { %v1061_v56 = vmul.f32 %v1060_v54, %v1054_v44 }
 0x821   : > { %v1063_v59 = vsel %vm1062_vm8, %v1054_v44, %v1061_v56 }
 0x822   : > { %v1066_v48 = vsel %vm1064_vm11, %v1065_v57, %v1063_v59 }
 0x823   : > { %v1067_v60 = vadd.f32 1e-06, %v1066_v48 }
 0x825   : > { %1422 = vrcp.f32 %v1067_v60  ;;  %v1079_v1 = vand.u32 2147483648, %v1067_v60  ;;  %v1077_v4 = vand.u32 2147483647, %v1067_v60  ;;  %vm1073_vm13 = vweird.f32 %v1067_v60 }
 0x827   : > { %v1080_v6 = vor.u32 1.1754944e-38, %v1079_v1  ;;  %vm1078_vm15 = vcmp.eq.f32.partialorder %v1077_v4, 8.507059e+37 }
 0x82b   : > { %v1423_v61 = vpop.eup %1422 }
 0x82c   : > { %v1069_v62 = vmul.f32 %v1423_v61, %v1067_v60  ;;  %vm1074_vm12 = vweird.f32 %v1423_v61 }
 0x82d   : > { %vm1075_vm14 = vmor %vm1073_vm13, %vm1074_vm12 }
 0x82e   : > { %v1070_v63 = vsub.f32 1.0, %v1069_v62 }
 0x830   : > { %v1071_v3 = vmul.f32 %v1423_v61, %v1070_v63 }
 0x832   : > { %v1072_v5 = vadd.f32 %v1423_v61, %v1071_v3 }
 0x834   : > { %v1076_v9 = vsel %vm1075_vm14, %v1423_v61, %v1072_v5 }
 0x835   : > { %v1081_v11 = vsel %vm1078_vm15, %v1080_v6, %v1076_v9 }
 0x836   : > { %v1086_v12 = vmul.f32 %v1085_v7, %v1081_v11 }
 0x838   : > { %v1090_v13 = vadd.f32 %v1395_v10, %v1086_v12 }
 0x83a   : > { %1310 = vmatmul.msk.f32.vlgmr.msrb.gmra.mxu1 %vm542_vm0, %v1090_v13 }
 0x8b7   : > { %v1119_v18 = vpop.f32.mrf.mxu1 }
 0x8b8   : > { %v1120_v19 = vadd.f32 %v1396_v17, %v1119_v18 }
 0x8ba   : > { %v1122_v20 = vmax.f32 %v1120_v19, 0.0 }
 0x8bc   : > { %1311 = vmatmul.msk.f32.vlgmr.msra.gmra.mxu3 %vm1131_vm1, %v1122_v20 }
 0x93f   : > { %v1152_v22 = vpop.f32.mrf.mxu3 }
 0x940   : > { %v1155_v23 = vadd.f32 %v1152_v22, %v1913_v35 }
 0x942   : > { %v1160_v24 = vadd.f32 %v1397_v21, %v1155_v23 }
 0x944   : > { %1161 = vst.msk [vmem:[%s537_s21] sm:$0xff] %vm542_vm0, %v1160_v24 }
 0x945   : > { %1541 = shalt.err (!%p1538_p12)
}
 0x946   : > { %1324 = dma.vmem_to_hbm [thread:$0]  (%p1745_p7), %s1176_s3, 128, %s1178_s25, %s1163_s17  }
 0x947 PF: > { %s2054_s13 = sld [smem:[#allocation13_spill]] }
 0x948   : > { %s2056_s20 = sld [smem:[#allocation15_spill]] }
 0x94d   : > { %s1189_s22 = sand.u32 1, %s2054_s13  }
 0x94e   : > { %p2057_p0 = scmp.ge.s32.totalorder %s2056_s20, 2  ;;  %s1190_s16 = scalar_lea.sflag [#allocation4], %s1189_s22 }
 0x950   : > { %p1338_p9 = pnand %p2057_p0, %p1713_p6 }
 0x952   : > { %p1339_p13 = pneg %p1338_p9 }
 0x954   : > { %1571 = dma.done.wait (%p1339_p13), %s1190_s16, 128  }
 0x955   : > { %1573 = vsyncadd (%p1339_p13), %s1190_s16, 4294967168  ;;  %s2058_s16 = sld [smem:[#allocation17_spill]]  ;;  %s2061_s29 = smov %s1580_s30 }
 0x956   : > { %s2059_s19 = sld [smem:[#allocation14_spill]] }
 0x957   : > { %s2060_s15 = sld [smem:[#allocation18_spill]] }
 0x95b   : > { %p30_p3 = scmp.ge.s32.totalorder %s2058_s16, 4  }
 0x95c   : > { %s2062_s30 = smov %s2059_s19 }
 0x95d   :  { %32 = sbr.rel (!%p30_p3) target bundleno = 14 (0xe), region = 138 }
 0x962   :  { %1196 = vsyncpa [#allocation3], 1 }
 0x963   :  { %1198 = vsyncpa [#allocation3 + $0x1], 1 }
 0x964   :  { %1199 = vsyncpa [#allocation6], 1 }
 0x965   :  { %1201 = vsyncpa [#allocation6 + $0x1], 1 }
 0x966   :  { %1202 = vsyncpa [#allocation4], 1 }
 0x967   :  { %1204 = vsyncpa [#allocation4 + $0x1], 1 }

</bundles_post_ra>
